<compile_context>
chip_gen: v6e
topology: v6e:2x2x1
jax: 0.10.0
libtpu: 0.0.40
codegen_flags: <defaults>
</compile_context>

<pallas_src>
import jax
import jax.numpy as jnp
from jax.experimental import pallas as pl
from jax.experimental.pallas import tpu as pltpu


def _att_kernel(enc_ref, hid_ref, out_ref):
    """One batch-block of attention weights.

    enc_ref : (S, TB, H)  encoder outputs, native (seq, batch, hidden) layout
    hid_ref : (L, TB, H)  decoder hidden state(s)
    out_ref : (S, TB, L)  softmax_S(tanh(enc . hid)) for this batch block
    """
    enc = enc_ref[...].astype(jnp.float32)      # (S, TB, H)
    hid = hid_ref[...].astype(jnp.float32)      # (L, TB, H)
    L = hid.shape[0]

    # scores[s, b, l] = sum_h enc[s, b, h] * hid[l, b, h]
    # L is tiny (decoder hidden layers, typically 1): a leading-dim broadcast multiply
    # on the VPU plus one lane reduction over H.  `hid[l]` indexes the *leading* dim
    # only -> no sublane gather / relayout, unlike the old per-batch middle-dim slices.
    if L == 1:
        scores = jnp.sum(enc * hid[0][None, :, :], axis=-1)[..., None]       # (S, TB, 1)
    else:
        cols = [jnp.sum(enc * hid[l][None, :, :], axis=-1) for l in range(L)]
        scores = jnp.stack(cols, axis=-1)                                     # (S, TB, L)

    scores = jnp.tanh(scores)

    # Softmax over S (torch dim=1 of (B,S,L)) == the leading axis here: max / sum are
    # elementwise VPU ops across the S vreg slices; exact divide so rows sum to 1.
    m = jnp.max(scores, axis=0, keepdims=True)            # (1, TB, L)
    e = jnp.exp(scores - m)                                # (S, TB, L)
    denom = jnp.sum(e, axis=0, keepdims=True)              # (1, TB, L)
    out_ref[...] = (e / denom).astype(out_ref.dtype)       # single whole-block store


def _batch_block(B, dtype):
    """Largest legal sublane-aligned batch block (respects dtype sublane packing)."""
    pack = {4: 8, 2: 16, 1: 32}.get(jnp.dtype(dtype).itemsize, 8)
    if B % pack == 0:
        return pack
    if B % 8 == 0:
        return 8
    return B            # ragged / tiny batch: one full-batch block (always legal)


def att_forward(hiddenState, encoderOut):
    """Pallas equivalent of Att.forward(hiddenState, encoderOut).

    hiddenState: (L, B, H),  encoderOut: (S, B, H)  ->  attW: (B, S, L)
    """
    S, B, H = encoderOut.shape
    L, Bh, Hh = hiddenState.shape
    assert (Bh, Hh) == (B, H), "hiddenState/encoderOut batch or hidden mismatch"

    TB = _batch_block(B, encoderOut.dtype)
    nb = B // TB

    out_sbl = pl.pallas_call(
        _att_kernel,
        out_shape=jax.ShapeDtypeStruct((S, B, L), encoderOut.dtype),
        grid=(nb,),
        in_specs=[
            # Native layouts read directly; the DMA engine does the batch split.
            pl.BlockSpec((S, TB, H), lambda i: (0, i, 0)),
            pl.BlockSpec((L, TB, H), lambda i: (0, i, 0)),
        ],
        out_specs=pl.BlockSpec((S, TB, L), lambda i: (0, i, 0)),
        compiler_params=pltpu.CompilerParams(
            dimension_semantics=("parallel",),
            vmem_limit_bytes=48 * 1024 * 1024,
        ),
    )(encoderOut, hiddenState)

    # (S, B, L) -> (B, S, L): the output is a factor-H smaller than the inputs, so
    # this wrapper-side transpose is cheap and keeps enc/hid relayout-free.
    return jnp.transpose(out_sbl, (1, 0, 2))


def att_reference(hiddenState, encoderOut):
    """Pure-JAX reference mirroring the PyTorch forward exactly."""
    enc = jnp.transpose(encoderOut, (1, 0, 2))                 # (B, S, H)
    hid = jnp.transpose(hiddenState, (1, 2, 0))                # (B, H, L)
    att = jnp.tanh(jnp.einsum('bsh,bhl->bsl', enc, hid))       # (B, S, L)
    return jax.nn.softmax(att, axis=1)


def _check(hiddenState, encoderOut):
    attW = jax.block_until_ready(att_forward(hiddenState, encoderOut))
    ref = att_reference(hiddenState, encoderOut)
    S, B, _ = encoderOut.shape
    L = hiddenState.shape[0]
    assert attW.shape == (B, S, L), attW.shape
    assert jnp.allclose(attW, ref, atol=1e-4, rtol=1e-4), "mismatch vs reference"


if __name__ == "__main__":
    key = jax.random.PRNGKey(0)
    k1, k2, k3, k4 = jax.random.split(key, 4)

    # 1) Tiny shapes matching the module's seq2seq decoder-step use:
    #    seq S=8, batch B=2, hidden H=32, decoder hidden layers L=1.
    S, B, H, L = 8, 2, 32, 1
    hiddenState = jax.random.normal(k1, (L, B, H), dtype=jnp.float32)
    encoderOut = jax.random.normal(k2, (S, B, H), dtype=jnp.float32)
    _check(hiddenState, encoderOut)

    # 2) Sublane/lane-aligned shapes exercising the batched grid path
    #    (TB=8 -> two "parallel" grid steps, pipelined enc DMA).
    S2, B2, H2, L2 = 128, 16, 256, 1
    hiddenState2 = jax.random.normal(k3, (L2, B2, H2), dtype=jnp.float32)
    encoderOut2 = jax.random.normal(k4, (S2, B2, H2), dtype=jnp.float32)
    _check(hiddenState2, encoderOut2)

    print("KERNEL_OK")
</pallas_src>

<mosaic_0001>
module attributes {stable_mosaic.version = 11 : i64} {
  func.func @_att_kernel(%arg0: i32, %arg1: memref<8x2x32xf32, #tpu.memory_space<vmem>>, %arg2: memref<1x2x32xf32, #tpu.memory_space<vmem>>, %arg3: memref<8x2x1xf32, #tpu.memory_space<vmem>>) attributes {dimension_semantics = [#tpu.dimension_semantics<parallel>], iteration_bounds = array<i64: 1>, scalar_prefetch = 0 : i64, scratch_operands = 0 : i64, tpu.core_type = #tpu.core_type<tc>, window_params = [{transform_indices = @transform_0, window_bounds = array<i64: 8, 2, 32>}, {transform_indices = @transform_1, window_bounds = array<i64: 1, 2, 32>}, {transform_indices = @transform_2, window_bounds = array<i64: 8, 2, 1>}]} {
    %c0 = arith.constant 0 : index
    %c0_0 = arith.constant 0 : index
    %c0_1 = arith.constant 0 : index
    %0 = vector.load %arg1[%c0, %c0_0, %c0_1] : memref<8x2x32xf32, #tpu.memory_space<vmem>>, vector<8x2x32xf32>
    %c0_2 = arith.constant 0 : index
    %c0_3 = arith.constant 0 : index
    %c0_4 = arith.constant 0 : index
    %1 = vector.load %arg2[%c0_2, %c0_3, %c0_4] : memref<1x2x32xf32, #tpu.memory_space<vmem>>, vector<1x2x32xf32>
    %2 = vector.shape_cast %1 : vector<1x2x32xf32> to vector<2x32xf32>
    %3 = vector.shape_cast %2 : vector<2x32xf32> to vector<1x2x32xf32>
    %4 = vector.broadcast %3 : vector<1x2x32xf32> to vector<8x2x32xf32>
    %5 = arith.mulf %0, %4 : vector<8x2x32xf32>
    %cst = arith.constant dense<0.000000e+00> : vector<8x2xf32>
    %6 = vector.multi_reduction <add>, %5, %cst [2] : vector<8x2x32xf32> to vector<8x2xf32>
    %7 = vector.shape_cast %6 : vector<8x2xf32> to vector<8x2x1xf32>
    %8 = math.tanh %7 : vector<8x2x1xf32>
    %cst_5 = arith.constant dense<0xFF800000> : vector<2x1xf32>
    %9 = vector.multi_reduction <maximumf>, %8, %cst_5 [0] : vector<8x2x1xf32> to vector<2x1xf32>
    %10 = vector.shape_cast %9 : vector<2x1xf32> to vector<1x2x1xf32>
    %11 = vector.broadcast %10 : vector<1x2x1xf32> to vector<8x2x1xf32>
    %12 = arith.subf %8, %11 : vector<8x2x1xf32>
    %13 = math.exp %12 : vector<8x2x1xf32>
    %cst_6 = arith.constant dense<0.000000e+00> : vector<2x1xf32>
    %14 = vector.multi_reduction <add>, %13, %cst_6 [0] : vector<8x2x1xf32> to vector<2x1xf32>
    %15 = vector.shape_cast %14 : vector<2x1xf32> to vector<1x2x1xf32>
    %16 = vector.broadcast %15 : vector<1x2x1xf32> to vector<8x2x1xf32>
    %17 = arith.divf %13, %16 : vector<8x2x1xf32>
    %c0_7 = arith.constant 0 : index
    %c0_8 = arith.constant 0 : index
    %c0_9 = arith.constant 0 : index
    %18 = vector.load %arg3[%c0_7, %c0_8, %c0_9] : memref<8x2x1xf32, #tpu.memory_space<vmem>>, vector<8x2x1xf32>
    tpu.vector_store %arg3[%c0_7, %c0_8, %c0_9], %17 {strides = array<i32>} : memref<8x2x1xf32, #tpu.memory_space<vmem>>, vector<8x2x1xf32>,
    return
  }
  func.func @transform_0(%arg0: i32) -> (i32, i32, i32) {
    %c0_i32 = arith.constant 0 : i32
    %c0_i32_0 = arith.constant 0 : i32
    %c0_i32_1 = arith.constant 0 : i32
    return %c0_i32, %arg0, %c0_i32_0 : i32, i32, i32
  }
  func.func @transform_1(%arg0: i32) -> (i32, i32, i32) {
    %c0_i32 = arith.constant 0 : i32
    %c0_i32_0 = arith.constant 0 : i32
    %c0_i32_1 = arith.constant 0 : i32
    return %c0_i32, %arg0, %c0_i32_0 : i32, i32, i32
  }
  func.func @transform_2(%arg0: i32) -> (i32, i32, i32) {
    %c0_i32 = arith.constant 0 : i32
    %c0_i32_0 = arith.constant 0 : i32
    %c0_i32_1 = arith.constant 0 : i32
    return %c0_i32, %arg0, %c0_i32_0 : i32, i32, i32
  }
}

</mosaic_0001>

<bundles_post_ra>
// kernel: tpu_custom_call.1
= control target key start
LH: loop header
LB: loop body
LE: loop exit
PB: predicated region body
PF: predicated region fallthrough
CT: control target
= control target key end

     0   :  { %7 = vsyncpa [#allocation3], 0  ;;  %s329_s0 = inlined_call_operand.hbm [shape: f32[8,2,32], index: 0, kind: input, shape index: {}]   ;;  %s330_s1 = inlined_call_operand.hbm [shape: f32[1,2,32], index: 1, kind: input, shape index: {}]   ;;  %s331_s2 = inlined_call_operand.vmem [shape: f32[8,2,1], index: 2, kind: output, shape index: {}]  }
   0x1   :  { %8 = vsyncpa [#allocation5], 0  ;;  %s248_s9 = smov [#allocation2]  }
   0x2   :  { %s14_s10 = sshll.u32 %s248_s9, 4  ;;  %s15_s10 = int_to_ptr.vmem [resolvable:$true] %s14_s10 }
   0x3   :  { %s212_s11 = scalar_lea.vmem %s15_s10, 256  ;;  %p217_p1 = scmp.lt.s32.totalorder %s15_s10, %s15_s10 }
   0x4   :  { %p213_p0 = scmp.ne.s32.totalorder %s15_s10, %s212_s11  ;;  %p218_p2 = scmp.lt.s32.totalorder %s212_s11, %s212_s11 }
   0x6   :  { %p219_p3 = por %p218_p2, %p217_p1 }
   0x8   :  { %p220_p4 = pnand %p219_p3, %p213_p0 }
   0xa   :  { %223 = shalt.err (!%p220_p4)
}
   0xb   :  { %s249_s12 = smov 32   ;;  %s250_s13 = smov 2  }
   0xc   :  { %20 = dma.hbm_to_vmem [thread:$0]  %s329_s0, 256, %s15_s10, [#allocation3], %s249_s12, %s249_s12, %s250_s13  }
   0xd   :  { %s251_s16 = smov [#allocation4]  }
   0xe   :  { %s27_s17 = sshll.u32 %s251_s16, 4  ;;  %s28_s17 = int_to_ptr.vmem [resolvable:$true] %s27_s17 }
   0xf   :  { %s232_s18 = scalar_lea.vmem %s28_s17, 32  ;;  %p237_p6 = scmp.lt.s32.totalorder %s28_s17, %s28_s17 }
  0x10   :  { %p233_p5 = scmp.ne.s32.totalorder %s28_s17, %s232_s18  ;;  %p238_p7 = scmp.lt.s32.totalorder %s232_s18, %s232_s18 }
  0x12   :  { %p239_p8 = por %p238_p7, %p237_p6 }
  0x14   :  { %p240_p9 = pnand %p239_p8, %p233_p5 }
  0x16   :  { %243 = shalt.err (!%p240_p9)
}
  0x17   :  { %30 = dma.hbm_to_vmem [thread:$0]  %s330_s1, 32, %s28_s17, [#allocation5]  }
  0x18   :  { %244 = dma.done.wait [#allocation3], 256  }
  0x19   :  { %245 = vsyncadd [#allocation3], 4294967040 }
  0x1a   :  { %246 = dma.done.wait [#allocation5], 32  }
  0x1b   :  { %247 = vsyncadd [#allocation5], 4294967264  ;;  %vm54_vm0 = vcmask 254976   ;;  %v39_v0 = vld [vmem:[#allocation2 + $0x4] sm:$0x3]  ;;  %vm87_vm1 = vcmask 1041408  }
  0x1c   :  { %v45_v1 = vld [vmem:[#allocation4] sm:$0x3]  ;;  %v37_v2 = vld [vmem:[#allocation2] sm:$0x3]  ;;  %v40_v5 = vld [vmem:[#allocation2 + $0x6] sm:$0x3] }
  0x1d   :  { %v48_v3 = vmul.f32 %v45_v1, %v39_v0  ;;  %v46_v4 = vmul.f32 %v45_v1, %v37_v2  ;;  %v38_v6 = vld [vmem:[#allocation2 + $0x2] sm:$0x3]  ;;  %v49_v7 = vmul.f32 %v45_v1, %v40_v5  ;;  %v42_v9 = vld [vmem:[#allocation2 + $0xa] sm:$0x3]  ;;  %v41_v10 = vld [vmem:[#allocation2 + $0x8] sm:$0x3] }
  0x1e   :  { %v47_v8 = vmul.f32 %v45_v1, %v38_v6  ;;  %v51_v15 = vmul.f32 %v45_v1, %v42_v9  ;;  %v50_v16 = vmul.f32 %v45_v1, %v41_v10  ;;  %v44_v17 = vld [vmem:[#allocation2 + $0xe] sm:$0x3]  ;;  %v43_v18 = vld [vmem:[#allocation2 + $0xc] sm:$0x3]  ;;  %vm151_vm2 = vcmask 1024  }
  0x1f   :  { %v61_v11 = vsel %vm54_vm0, %v48_v3, 0.0  ;;  %v55_v12 = vsel %vm54_vm0, %v46_v4, 0.0  ;;  %v64_v13 = vsel %vm54_vm0, %v49_v7, 0.0  ;;  %v53_v21 = vmul.f32 %v45_v1, %v44_v17 }
  0x20   :  { %62 = vadd.xlane.f32.xlu1 %v61_v11  ;;  %56 = vadd.xlane.f32.xlu0 %v55_v12  ;;  %v58_v14 = vsel %vm54_vm0, %v47_v8, 0.0  ;;  %v70_v19 = vsel %vm54_vm0, %v51_v15, 0.0  ;;  %v67_v20 = vsel %vm54_vm0, %v50_v16, 0.0  ;;  %v52_v22 = vmul.f32 %v45_v1, %v43_v18 }
  0x21   :  { %v76_v23 = vsel %vm54_vm0, %v53_v21, 0.0 }
  0x22   :  { %v73_v24 = vsel %vm54_vm0, %v52_v22, 0.0 }
  0x24   :  { %65 = vadd.xlane.f32.xlu1 %v64_v13  ;;  %59 = vadd.xlane.f32.xlu0 %v58_v14 }
  0x28   :  { %71 = vadd.xlane.f32.xlu1 %v70_v19  ;;  %68 = vadd.xlane.f32.xlu0 %v67_v20 }
  0x2c   :  { %77 = vadd.xlane.f32.xlu1 %v76_v23  ;;  %74 = vadd.xlane.f32.xlu0 %v73_v24 }
  0xa9   :  { %v63_v25 = vpop.xlane.xlu1 %62  ;;  %v57_v26 = vpop.xlane.xlu0 %56 }
  0xaa   :  { %170 = vtanh.f32 %v57_v26 }
  0xad   :  { %v66_v27 = vpop.xlane.xlu1 %65  ;;  %v60_v28 = vpop.xlane.xlu0 %59 }
  0xae   :  { %172 = vtanh.f32 %v60_v28 }
  0xb1   :  { %v72_v29 = vpop.xlane.xlu1 %71  ;;  %v69_v30 = vpop.xlane.xlu0 %68 }
  0xb2   :  { %174 = vtanh.f32 %v72_v29 }
  0xb3   :  { %176 = vtanh.f32 %v69_v30 }
  0xb4   :  { %178 = vtanh.f32 %v66_v27 }
  0xb5   :  { %180 = vtanh.f32 %v63_v25  ;;  %v78_v31 = vpop.xlane.xlu1 %77  ;;  %v75_v32 = vpop.xlane.xlu0 %74 }
  0xb6   :  { %182 = vtanh.f32 %v78_v31 }
  0xb7   :  { %184 = vtanh.f32 %v75_v32  ;;  %v171_v33 = vpop.eup %170 }
  0xb8   :  { %v88_v42 = vsel %vm87_vm1, %v171_v33, -inf }
  0xbb   :  { %v173_v34 = vpop.eup %172 }
  0xbc   :  { %v89_v43 = vsel %vm87_vm1, %v173_v34, -inf }
  0xbf   :  { %v175_v35 = vpop.eup %174 }
  0xc0   :  { %v177_v36 = vpop.eup %176  ;;  %v94_v38 = vsel %vm87_vm1, %v175_v35, -inf }
  0xc1   :  { %v179_v37 = vpop.eup %178  ;;  %v92_v39 = vsel %vm87_vm1, %v177_v36, -inf  ;;  %v95_v46 = vmax.f32 %v89_v43, %v94_v38 }
  0xc2   :  { %v181_v40 = vpop.eup %180  ;;  %v91_v45 = vsel %vm87_vm1, %v179_v37, -inf  ;;  %v93_v47 = vmax.f32 %v88_v42, %v92_v39 }
  0xc3   :  { %v183_v41 = vpop.eup %182  ;;  %v90_v49 = vsel %vm87_vm1, %v181_v40, -inf }
  0xc4   :  { %v185_v44 = vpop.eup %184  ;;  %v98_v48 = vsel %vm87_vm1, %v183_v41, -inf  ;;  %v100_v53 = vmax.f32 %v93_v47, %v95_v46 }
  0xc5   :  { %v99_v50 = vmax.f32 %v91_v45, %v98_v48  ;;  %v96_v51 = vsel %vm87_vm1, %v185_v44, -inf }
  0xc6   :  { %v97_v52 = vmax.f32 %v90_v49, %v96_v51 }
  0xc8   :  { %v101_v54 = vmax.f32 %v97_v52, %v99_v50 }
  0xca   :  { %v102_v55 = vmax.f32 %v100_v53, %v101_v54 }
  0xcc   :  { %v103_v56 = vsub.f32 %v171_v33, %v102_v55  ;;  %v104_v57 = vsub.f32 %v173_v34, %v102_v55  ;;  %v105_v58 = vsub.f32 %v181_v40, %v102_v55  ;;  %v106_v59 = vsub.f32 %v179_v37, %v102_v55 }
  0xcd   :  { %v107_v60 = vsub.f32 %v177_v36, %v102_v55  ;;  %v108_v0 = vsub.f32 %v175_v35, %v102_v55  ;;  %v109_v2 = vsub.f32 %v185_v44, %v102_v55  ;;  %v110_v4 = vsub.f32 %v183_v41, %v102_v55 }
  0xce   :  { %v111_v61 = vmul.f32 1.442695, %v103_v56  ;;  %v113_v62 = vmul.f32 1.442695, %v104_v57  ;;  %v115_v63 = vmul.f32 1.442695, %v105_v58 }
  0xcf   :  { %v117_v1 = vmul.f32 1.442695, %v106_v59  ;;  %v119_v3 = vmul.f32 1.442695, %v107_v60  ;;  %v121_v5 = vmul.f32 1.442695, %v108_v0 }
  0xd0   :  { %186 = vpow2.f32 %v111_v61  ;;  %v123_v6 = vmul.f32 1.442695, %v109_v2  ;;  %v125_v7 = vmul.f32 1.442695, %v110_v4 }
  0xd1   :  { %188 = vpow2.f32 %v113_v62 }
  0xd2   :  { %190 = vpow2.f32 %v115_v63 }
  0xd3   :  { %192 = vpow2.f32 %v117_v1 }
  0xd4   :  { %194 = vpow2.f32 %v119_v3 }
  0xd5   :  { %196 = vpow2.f32 %v121_v5 }
  0xd6   :  { %198 = vpow2.f32 %v123_v6 }
  0xd7   :  { %200 = vpow2.f32 %v125_v7 }
  0xdd   :  { %v187_v8 = vpop.eup %186 }
  0xde   :  { %v189_v9 = vpop.eup %188  ;;  %v127_v10 = vsel %vm87_vm1, %v187_v8, 0.0 }
  0xdf   :  { %v191_v11 = vpop.eup %190  ;;  %v128_v12 = vsel %vm87_vm1, %v189_v9, 0.0 }
  0xe0   :  { %v193_v13 = vpop.eup %192  ;;  %v129_v14 = vadd.f32 %v128_v12, %v127_v10  ;;  %v130_v15 = vsel %vm87_vm1, %v191_v11, 0.0 }
  0xe1   :  { %v195_v16 = vpop.eup %194  ;;  %v132_v18 = vsel %vm87_vm1, %v193_v13, 0.0 }
  0xe2   :  { %v131_v17 = vadd.f32 %v130_v15, %v129_v14  ;;  %v197_v19 = vpop.eup %196  ;;  %v134_v21 = vsel %vm87_vm1, %v195_v16, 0.0 }
  0xe3   :  { %v199_v22 = vpop.eup %198  ;;  %v136_v24 = vsel %vm87_vm1, %v197_v19, 0.0 }
  0xe4   :  { %v133_v20 = vadd.f32 %v132_v18, %v131_v17  ;;  %v201_v25 = vpop.eup %200  ;;  %v138_v27 = vsel %vm87_vm1, %v199_v22, 0.0 }
  0xe5   :  { %v140_v29 = vsel %vm87_vm1, %v201_v25, 0.0 }
  0xe6   :  { %v135_v23 = vadd.f32 %v134_v21, %v133_v20 }
  0xe8   :  { %v137_v26 = vadd.f32 %v136_v24, %v135_v23 }
  0xea   :  { %v139_v28 = vadd.f32 %v138_v27, %v137_v26 }
  0xec   :  { %v141_v30 = vadd.f32 %v140_v29, %v139_v28 }
  0xee   :  { %202 = vrcp.f32 %v141_v30 }
  0xfb   :  { %v203_v31 = vpop.eup %202 }
  0xfc   :  { %v143_v32 = vmul.f32 %v203_v31, %v187_v8  ;;  %v144_v33 = vmul.f32 %v203_v31, %v189_v9  ;;  %v145_v34 = vmul.f32 %v203_v31, %v191_v11  ;;  %v146_v35 = vmul.f32 %v203_v31, %v193_v13 }
  0xfd   :  { %v147_v36 = vmul.f32 %v203_v31, %v195_v16  ;;  %v148_v37 = vmul.f32 %v203_v31, %v197_v19  ;;  %v149_v38 = vmul.f32 %v203_v31, %v199_v22  ;;  %v150_v39 = vmul.f32 %v203_v31, %v201_v25 }
  0xfe   :  { %152 = vst.msk [vmem:[%s331_s2] sm:$0x3] %vm151_vm2, %v143_v32  ;;  %153 = vst.msk [vmem:[%s331_s2 + $0x2] sm:$0x3] %vm151_vm2, %v144_v33 }
  0xff   :  { %154 = vst.msk [vmem:[%s331_s2 + $0x4] sm:$0x3] %vm151_vm2, %v145_v34  ;;  %155 = vst.msk [vmem:[%s331_s2 + $0x6] sm:$0x3] %vm151_vm2, %v146_v35 }
 0x100   :  { %156 = vst.msk [vmem:[%s331_s2 + $0x8] sm:$0x3] %vm151_vm2, %v147_v36  ;;  %157 = vst.msk [vmem:[%s331_s2 + $0xa] sm:$0x3] %vm151_vm2, %v148_v37 }
 0x101   :  { %158 = vst.msk [vmem:[%s331_s2 + $0xc] sm:$0x3] %vm151_vm2, %v149_v38  ;;  %159 = vst.msk [vmem:[%s331_s2 + $0xe] sm:$0x3] %vm151_vm2, %v150_v39 }
 0x102   :  { %164 = vsyncpa [#allocation3], 1 }
 0x103   :  { %165 = vsyncpa [#allocation5], 1 }

</bundles_post_ra>
